<compile_context>
chip_gen: v6e
topology: v6e:2x2x1
jax: 0.10.0
libtpu: 0.0.40
codegen_flags: <defaults>
</compile_context>

<pallas_src>
import jax
import jax.numpy as jnp
import numpy as np
from jax.experimental import pallas as pl
from jax.experimental.pallas import tpu as pltpu


def _cdiv(a, b):
    return -(-a // b)


def _round_up(a, b):
    return _cdiv(a, b) * b


# Term lane indices inside the (16, 128) per-block partial-sum output.
_NUM_TERMS = 16
(_GUID_F, _GUID_C, _FUSE_F, _FUSE_C, _MERG_F, _MERG_C,
 _UNM_F, _UNM_C, _PS_F, _PS_C,
 _OP_REST_F, _OP_REST_C, _OP_BG_F, _OP_BG_C, _NV, _PAD) = range(_NUM_TERMS)


# ----------------------------------------------------------------------------
# Fused ray-reduction kernel factory.
#   x_ref  : (C_total, TILE_N) stacked lane-dense block (rows = channels)
#   out_ref: (16, 128)         per-block lane partial sums (one row per term)
# `off` maps segment name -> (start_row, n_rows); `flags` selects which
# optional terms are compiled in (trace-time specialization).
# ----------------------------------------------------------------------------
def _make_fused_kernel(off, K, n_chunks, flags):
    has_rgb_c = flags['rgb_c']
    has_inst_c = flags['inst_c']
    has_merg_c = flags['merg_c']
    has_unm_c = flags['unm_c']
    has_op_c = flags['op_c']
    has_ps = flags['ps']

    def lane_fold(x):
        # (R, n_chunks*128) -> (1, 128): fold lanes with VPU adds on static
        # 128-lane chunk slices, then one small cross-sublane reduce.
        acc = x[:, 0:128]
        for j in range(1, n_chunks):
            acc = acc + x[:, j * 128:(j + 1) * 128]
        if acc.shape[0] > 1:
            acc = jnp.sum(acc, axis=0, keepdims=True)
        return acc

    def kernel(x_ref, out_ref):
        def seg(name, lo=0, hi=None):
            s, r = off[name]
            if hi is None:
                hi = r
            return x_ref[s + lo:s + hi, :]

        # Zero-init so skipped (absent) term rows and the pad row are 0.
        out_ref[...] = jnp.zeros(out_ref.shape, jnp.float32)

        def put(idx, val):
            out_ref[idx:idx + 1, :] = val

        zero = jnp.zeros((1, 128), jnp.float32)
        v = seg('valid')                              # (1, T)
        rgbs = seg('rgbs')                            # (3, T)

        # --- guidance / fused / merged MSE terms ----------------------------
        def mse3(name):                               # sum_c v * (pred_c - rgbs_c)^2
            d = seg(name) - rgbs
            return lane_fold(d * d * v)

        put(_GUID_F, mse3('rgb_fine'))
        put(_FUSE_F, mse3('rgbi_fine'))
        put(_MERG_F, mse3('rgbm_fine'))
        if has_rgb_c:
            put(_GUID_C, mse3('rgb_coarse'))
        if has_inst_c:
            put(_FUSE_C, mse3('rgbi_coarse'))
        if has_merg_c:
            put(_MERG_C, mse3('rgbm_coarse'))

        # --- unmasked + PS terms (fine/coarse share broadcast targets) ------
        im = seg('im')                                # (K, T)
        imv = im * v
        if has_ps:
            nim0 = 1.0 - seg('im', 0, 1)              # (1, T)
            nim0v = nim0 * v
            rgbs_ps = seg('rgbs_ps')                  # (3, T)
        u_f = u_c = p_f = p_c = zero
        for c in range(3):
            t = rgbs[c:c + 1, :] * im                 # (K, T) shared target
            pf = seg('unm_fine', c * K, (c + 1) * K)  # (K, T)
            d = t - pf
            u_f = u_f + lane_fold(d * d * imv)
            if has_ps:
                tps = rgbs_ps[c:c + 1, :] * nim0      # (1, T) shared target
                dps = tps - pf[0:1, :]
                p_f = p_f + lane_fold(dps * dps * nim0v)
            if has_unm_c:
                pc = seg('unm_coarse', c * K, (c + 1) * K)
                d = t - pc
                u_c = u_c + lane_fold(d * d * imv)
                if has_ps:
                    dps = tps - pc[0:1, :]
                    p_c = p_c + lane_fold(dps * dps * nim0v)
        put(_UNM_F, u_f)
        if has_unm_c:
            put(_UNM_C, u_c)
        if has_ps:
            put(_PS_F, p_f)
            if has_unm_c:
                put(_PS_C, p_c)

        # --- opacity terms (fine/coarse share weight columns) ---------------
        w0v = seg('w0_bg') * v                        # (1, T)
        if K > 1:
            imwv = seg('imw_rest') * v                # (K-1, T)
        im0 = seg('im', 0, 1)                         # (1, T)

        def opa(name):
            op0 = jnp.clip(seg(name, 0, 1), 0.0, 1.0)
            bg = lane_fold((op0 - im0) ** 2 * w0v)
            if K > 1:
                opr = jnp.clip(seg(name, 1, K), 0.0, 1.0)
                rest = lane_fold((opr - seg('im', 1, K)) ** 2 * imwv)
            else:
                rest = zero
            return rest, bg

        rest_f, bg_f = opa('op_fine')
        put(_OP_REST_F, rest_f)
        put(_OP_BG_F, bg_f)
        if has_op_c:
            rest_c, bg_c = opa('op_coarse')
            put(_OP_REST_C, rest_c)
            put(_OP_BG_C, bg_c)

        # valid-ray count (pad lanes are 0)
        put(_NV, lane_fold(v))

    return kernel


# ----------------------------------------------------------------------------
# Sigma regularizer: plain JAX (pure elementwise + mean; XLA fuses optimally).
# ----------------------------------------------------------------------------
def reg_sq_mean(x):
    x = jnp.asarray(x, jnp.float32)
    return jnp.mean((jnp.maximum(x, 0.0) - jnp.float32(1e-5)) ** 2)


# ----------------------------------------------------------------------------
# UDCLoss forward: one fused pallas_call over rays.
# ----------------------------------------------------------------------------
def udc_loss(inputs, batch, conf, *, max_tile_n=2048):
    # TODO(synk): torch's OpacityLoss returns None when valid_mask.sum()==0
    # (data-dependent early return); here nv==0 yields NaN instead.
    valid_bool = jnp.asarray(batch['valid_mask']).reshape(-1)
    N = valid_bool.shape[0]

    rgbs = jnp.reshape(jnp.asarray(batch['rgbs'], jnp.float32), (-1, 3))
    im = batch['instance_mask']
    imw = batch['instance_mask_weight']
    if im.ndim == 3 and im.shape[0] == 1:
        im = im[0]
        imw = imw[0]
    im_f = jnp.asarray(im, jnp.float32)
    imw_f = jnp.asarray(imw, jnp.float32)
    K = im_f.shape[1]

    flags = dict(
        rgb_c='rgb_coarse' in inputs,
        inst_c='rgb_instance_coarse' in inputs,
        merg_c='rgb_merged_coarse' in inputs,
        unm_c='rgb_unmasked_coarse' in inputs,
        op_c='opacity_unmasked_coarse' in inputs,
        ps=conf['color_loss_unmasked_ps_weight'] != 0,
    )

    # Background weight column with its (valid-row) min zeroed — tiny JAX
    # reduction, shared between fine and coarse opacity terms.
    w0 = imw_f[:, 0]
    minv = jnp.min(jnp.where(valid_bool, w0, jnp.inf))
    w0_bg = jnp.where(w0 == minv, 0.0, w0)

    # Grid sizing: keep tiles large (step overhead) but give v7x's two
    # TensorCores >= 2 parallel blocks whenever N > 128.
    tile_n = max(128, min(max_tile_n, _round_up(_cdiv(N, 2), 128)))
    n_pad = _round_up(N, tile_n)
    g = n_pad // tile_n

    # ---- build ONE stacked (N, C_total) array, then transpose + pad --------
    segs = []

    def add(name, arr):
        arr = jnp.asarray(arr, jnp.float32)
        if arr.ndim == 1:
            arr = arr[:, None]
        segs.append((name, arr.reshape(N, -1)))

    add('valid', valid_bool.astype(jnp.float32))
    add('rgbs', rgbs)
    if flags['ps']:
        add('rgbs_ps', jnp.reshape(jnp.asarray(batch['rgbs_ps'], jnp.float32), (-1, 3)))
    add('im', im_f)
    if K > 1:
        add('imw_rest', imw_f[:, 1:])
    add('w0_bg', w0_bg)
    add('rgb_fine', jnp.reshape(inputs['rgb_fine'], (-1, 3)))
    if flags['rgb_c']:
        add('rgb_coarse', jnp.reshape(inputs['rgb_coarse'], (-1, 3)))
    add('rgbi_fine', jnp.reshape(inputs['rgb_instance_fine'], (-1, 3)))
    if flags['inst_c']:
        add('rgbi_coarse', jnp.reshape(inputs['rgb_instance_coarse'], (-1, 3)))
    add('rgbm_fine', jnp.reshape(inputs['rgb_merged_fine'], (-1, 3)))
    if flags['merg_c']:
        add('rgbm_coarse', jnp.reshape(inputs['rgb_merged_coarse'], (-1, 3)))
    add('unm_fine', jnp.reshape(inputs['rgb_unmasked_fine'], (N, 3 * K)))
    if flags['unm_c']:
        add('unm_coarse', jnp.reshape(inputs['rgb_unmasked_coarse'], (N, 3 * K)))
    add('op_fine', inputs['opacity_unmasked_fine'])
    if flags['op_c']:
        add('op_coarse', inputs['opacity_unmasked_coarse'])

    off = {}
    cols = []
    cur = 0
    for name, arr in segs:
        off[name] = (cur, arr.shape[1])
        cur += arr.shape[1]
        cols.append(arr)
    C = cur
    stacked = jnp.concatenate(cols, axis=1)          # (N, C)   one concatenate
    stacked = jnp.transpose(stacked)                 # (C, N)   one transpose
    stacked = jnp.pad(stacked, ((0, 0), (0, n_pad - N)))  # one pad (valid=0)

    out = pl.pallas_call(
        _make_fused_kernel(off, K, tile_n // 128, flags),
        out_shape=jax.ShapeDtypeStruct((g * _NUM_TERMS, 128), jnp.float32),
        grid=(g,),
        in_specs=[pl.BlockSpec((C, tile_n), lambda i: (0, i))],
        out_specs=pl.BlockSpec((_NUM_TERMS, 128), lambda i: (i, 0)),
        compiler_params=pltpu.CompilerParams(dimension_semantics=("parallel",)),
    )(stacked)

    # Final reduction over blocks and the 128 kept lanes (tiny, done in JAX).
    sums = jnp.sum(out.reshape(g, _NUM_TERMS, 128), axis=(0, 2))
    nv = sums[_NV]
    inv3nv = 1.0 / (3.0 * nv)

    loss_dict = {}

    g_loss = sums[_GUID_F] * inv3nv
    if flags['rgb_c']:
        g_loss = g_loss + sums[_GUID_C] * inv3nv
    loss_dict['color_loss_guidance'] = conf['color_loss_guidance_weight'] * g_loss

    f_loss = sums[_FUSE_F] * inv3nv
    if flags['inst_c']:
        f_loss = f_loss + sums[_FUSE_C] * inv3nv
    loss_dict['color_loss_fused'] = conf['color_loss_fused_weight'] * f_loss

    u_loss = sums[_UNM_F] / (3.0 * nv * K)
    if flags['unm_c']:
        u_loss = u_loss + sums[_UNM_C] / (3.0 * nv * K)
    loss_dict['color_loss_unmasked'] = conf['color_loss_unmasked_weight'] * u_loss

    if flags['ps']:
        p_loss = sums[_PS_F] * inv3nv
        if flags['unm_c']:
            p_loss = p_loss + sums[_PS_C] * inv3nv
        loss_dict['unmasked_ps_color_loss'] = conf['color_loss_unmasked_ps_weight'] * p_loss

    if conf['reg_loss_modisigam_weight'] != 0:
        r = jnp.float32(0.0)
        if '3D_sigmas_modi_coarse' in inputs and inputs['3D_sigmas_modi_coarse'].size > 0:
            r = reg_sq_mean(inputs['3D_sigmas_modi_coarse'])
        if '3D_sigmas_modi_fine' in inputs and inputs['3D_sigmas_modi_fine'].size > 0:
            r = r + reg_sq_mean(inputs['3D_sigmas_modi_fine'])
        loss_dict['reg_loss_modisigam'] = conf['reg_loss_modisigam_weight'] * r

    # TODO(synk): K == 1 divides by zero in torch (empty .mean() -> NaN); here
    # the rest-term contribution is simply 0.
    rest_den = nv * (K - 1) if K > 1 else 1.0
    o_loss = sums[_OP_REST_F] / rest_den + sums[_OP_BG_F] / nv
    if flags['op_c']:
        o_loss = o_loss + sums[_OP_REST_C] / rest_den + sums[_OP_BG_C] / nv
    loss_dict['opacity_loss'] = conf['opacity_loss_weight'] * o_loss

    m_loss = sums[_MERG_F] * inv3nv
    if flags['merg_c']:
        m_loss = m_loss + sums[_MERG_C] * inv3nv
    loss_dict['color_loss_merged'] = conf['color_loss_merged_weight'] * m_loss

    loss_sum = sum(list(loss_dict.values()))
    for k in list(loss_dict.keys()):
        if f'{k}_weight' in conf:
            loss_dict[k] = loss_dict[k] / conf[f'{k}_weight']
    return loss_sum, loss_dict


# ----------------------------------------------------------------------------
# Pure-numpy reference mirroring the PyTorch code (correctness check).
# ----------------------------------------------------------------------------
def numpy_reference(inputs, batch, conf):
    a = lambda x: np.asarray(x, dtype=np.float64)
    rgbs = a(batch['rgbs']).reshape(-1, 3)
    rgbs_ps = a(batch['rgbs_ps']).reshape(-1, 3)
    valid = np.asarray(batch['valid_mask']).reshape(-1).astype(bool)
    mask3 = np.repeat(valid[:, None], 3, axis=1)
    im = np.asarray(batch['instance_mask']).astype(bool)
    imw = a(batch['instance_mask_weight'])
    K = im.shape[1]

    d = {}

    def masked_mse(pred):
        return ((a(pred)[mask3] - rgbs[mask3]) ** 2).mean()

    d['color_loss_guidance'] = conf['color_loss_guidance_weight'] * (
        masked_mse(inputs['rgb_fine']) + masked_mse(inputs['rgb_coarse']))
    d['color_loss_fused'] = conf['color_loss_fused_weight'] * (
        masked_mse(inputs['rgb_instance_fine']) + masked_mse(inputs['rgb_instance_coarse']))

    t_exp = np.repeat(rgbs[:, :, None], K, axis=2)
    im_exp = np.repeat(im[:, None, :].astype(np.float64), 3, axis=1)

    def unmasked(pred):
        aa = (t_exp * im_exp)[mask3]
        bb = a(pred)[mask3]
        mm = im_exp[mask3]
        return (((aa - bb) ** 2) * mm).mean()

    d['color_loss_unmasked'] = conf['color_loss_unmasked_weight'] * (
        unmasked(inputs['rgb_unmasked_fine']) + unmasked(inputs['rgb_unmasked_coarse']))

    nim = (~im).astype(np.float64)[:, 0:1]
    tps_exp = rgbs_ps[:, :, None]
    nim_exp = np.repeat(nim[:, None, :], 3, axis=1)

    def ps(pred):
        aa = (tps_exp * nim_exp)[mask3]
        bb = a(pred)[:, :, 0:1][mask3]
        mm = nim_exp[mask3]
        return (((aa - bb) ** 2) * mm).mean()

    d['unmasked_ps_color_loss'] = conf['color_loss_unmasked_ps_weight'] * (
        ps(inputs['rgb_unmasked_fine']) + ps(inputs['rgb_unmasked_coarse']))

    def reg(x):
        x = np.maximum(a(x), 0.0)
        return ((x - 1e-5) ** 2).mean()

    d['reg_loss_modisigam'] = conf['reg_loss_modisigam_weight'] * (
        reg(inputs['3D_sigmas_modi_coarse']) + reg(inputs['3D_sigmas_modi_fine']))

    imv = im[valid].astype(np.float64)
    imwv = imw[valid].copy()
    wbg = imwv[:, 0:1].copy()
    wbg[wbg == wbg.min()] = 0.0

    def opa(op):
        opv = np.clip(a(op)[valid], 0.0, 1.0)
        r = (((opv[:, 1:] - imv[:, 1:]) ** 2) * imwv[:, 1:]).mean()
        b = (((opv[:, 0:1] - imv[:, 0:1]) ** 2) * wbg).mean()
        return r + b

    d['opacity_loss'] = conf['opacity_loss_weight'] * (
        opa(inputs['opacity_unmasked_fine']) + opa(inputs['opacity_unmasked_coarse']))

    d['color_loss_merged'] = conf['color_loss_merged_weight'] * (
        masked_mse(inputs['rgb_merged_fine']) + masked_mse(inputs['rgb_merged_coarse']))

    loss_sum = sum(d.values())
    for k in list(d.keys()):
        if f'{k}_weight' in conf:
            d[k] = d[k] / conf[f'{k}_weight']
    return loss_sum, d


if __name__ == "__main__":
    N, K, M = 256, 4, 512   # rays, instances (incl. background), sigma samples

    conf = {
        'color_loss_guidance_weight': 1.0,
        'color_loss_unmasked_weight': 0.5,
        'color_loss_unmasked_ps_weight': 0.25,
        'color_loss_fused_weight': 1.0,
        'reg_loss_modisigam_weight': 0.1,
        'opacity_loss_weight': 2.0,
        'color_loss_merged_weight': 1.0,
    }

    key = jax.random.PRNGKey(0)
    ks = jax.random.split(key, 20)

    batch = {
        'rgbs': jax.random.uniform(ks[0], (N, 3), jnp.float32),
        'rgbs_ps': jax.random.uniform(ks[1], (N, 3), jnp.float32),
        'valid_mask': jax.random.bernoulli(ks[2], 0.7, (N,)).at[0].set(True),
        'instance_mask': jax.random.bernoulli(ks[3], 0.5, (N, K)),
        'instance_mask_weight': jax.random.uniform(ks[4], (N, K), jnp.float32,
                                                   minval=0.1, maxval=2.0),
    }
    inputs = {
        'rgb_fine': jax.random.uniform(ks[5], (N, 3), jnp.float32),
        'rgb_coarse': jax.random.uniform(ks[6], (N, 3), jnp.float32),
        'rgb_instance_fine': jax.random.uniform(ks[7], (N, 3), jnp.float32),
        'rgb_instance_coarse': jax.random.uniform(ks[8], (N, 3), jnp.float32),
        'rgb_merged_fine': jax.random.uniform(ks[9], (N, 3), jnp.float32),
        'rgb_merged_coarse': jax.random.uniform(ks[10], (N, 3), jnp.float32),
        'rgb_unmasked_fine': jax.random.uniform(ks[11], (N, 3, K), jnp.float32),
        'rgb_unmasked_coarse': jax.random.uniform(ks[12], (N, 3, K), jnp.float32),
        'opacity_unmasked_fine': jax.random.uniform(ks[13], (N, K), jnp.float32,
                                                    minval=-0.2, maxval=1.2),
        'opacity_unmasked_coarse': jax.random.uniform(ks[14], (N, K), jnp.float32,
                                                      minval=-0.2, maxval=1.2),
        '3D_sigmas_modi_coarse': jax.random.uniform(ks[15], (M,), jnp.float32,
                                                    minval=-0.5, maxval=0.5),
        '3D_sigmas_modi_fine': jax.random.uniform(ks[16], (M,), jnp.float32,
                                                  minval=-0.5, maxval=0.5),
    }

    loss_sum, loss_dict = udc_loss(inputs, batch, conf)
    loss_sum = jax.block_until_ready(loss_sum)
    loss_dict = {k: jax.block_until_ready(v) for k, v in loss_dict.items()}

    ref_sum, ref_dict = numpy_reference(inputs, batch, conf)
    np.testing.assert_allclose(float(loss_sum), ref_sum, rtol=1e-4, atol=1e-6)
    for k in ref_dict:
        np.testing.assert_allclose(float(loss_dict[k]), ref_dict[k], rtol=1e-4, atol=1e-6)

    print("KERNEL_OK")
</pallas_src>

<mosaic_0001>
module attributes {stable_mosaic.version = 11 : i64} {
  func.func @kernel(%arg0: i32, %arg1: memref<65x128xf32, #tpu.memory_space<vmem>>, %arg2: memref<16x128xf32, #tpu.memory_space<vmem>>) attributes {dimension_semantics = [#tpu.dimension_semantics<parallel>], iteration_bounds = array<i64: 2>, scalar_prefetch = 0 : i64, scratch_operands = 0 : i64, tpu.core_type = #tpu.core_type<tc>, window_params = [{transform_indices = @transform_0, window_bounds = array<i64: 65, 128>}, {transform_indices = @transform_1, window_bounds = array<i64: 16, 128>}]} {
    %cst = arith.constant 0.000000e+00 : f32
    %0 = vector.broadcast %cst : f32 to vector<16x128xf32>
    %c0 = arith.constant 0 : index
    %c0_0 = arith.constant 0 : index
    %1 = vector.load %arg2[%c0, %c0_0] : memref<16x128xf32, #tpu.memory_space<vmem>>, vector<16x128xf32>
    tpu.vector_store %arg2[%c0, %c0_0], %0 {strides = array<i32>} : memref<16x128xf32, #tpu.memory_space<vmem>>, vector<16x128xf32>,
    %cst_1 = arith.constant 0.000000e+00 : f32
    %2 = vector.broadcast %cst_1 : f32 to vector<1x128xf32>
    %c0_2 = arith.constant 0 : index
    %c0_3 = arith.constant 0 : index
    %3 = vector.load %arg1[%c0_2, %c0_3] : memref<65x128xf32, #tpu.memory_space<vmem>>, vector<1x128xf32>
    %c1 = arith.constant 1 : index
    %c0_4 = arith.constant 0 : index
    %4 = vector.load %arg1[%c1, %c0_4] : memref<65x128xf32, #tpu.memory_space<vmem>>, vector<3x128xf32>
    %c15 = arith.constant 15 : index
    %c0_5 = arith.constant 0 : index
    %5 = vector.load %arg1[%c15, %c0_5] : memref<65x128xf32, #tpu.memory_space<vmem>>, vector<3x128xf32>
    %6 = arith.subf %5, %4 : vector<3x128xf32>
    %7 = arith.mulf %6, %6 : vector<3x128xf32>
    %8 = vector.broadcast %3 : vector<1x128xf32> to vector<3x128xf32>
    %9 = arith.mulf %7, %8 : vector<3x128xf32>
    %cst_6 = arith.constant dense<0.000000e+00> : vector<128xf32>
    %10 = vector.multi_reduction <add>, %9, %cst_6 [0] : vector<3x128xf32> to vector<128xf32>
    %11 = vector.shape_cast %10 : vector<128xf32> to vector<1x128xf32>
    %c0_7 = arith.constant 0 : index
    %c0_8 = arith.constant 0 : index
    %12 = vector.load %arg2[%c0_7, %c0_8] : memref<16x128xf32, #tpu.memory_space<vmem>>, vector<1x128xf32>
    tpu.vector_store %arg2[%c0_7, %c0_8], %11 {strides = array<i32>} : memref<16x128xf32, #tpu.memory_space<vmem>>, vector<1x128xf32>,
    %c21 = arith.constant 21 : index
    %c0_9 = arith.constant 0 : index
    %13 = vector.load %arg1[%c21, %c0_9] : memref<65x128xf32, #tpu.memory_space<vmem>>, vector<3x128xf32>
    %14 = arith.subf %13, %4 : vector<3x128xf32>
    %15 = arith.mulf %14, %14 : vector<3x128xf32>
    %16 = vector.broadcast %3 : vector<1x128xf32> to vector<3x128xf32>
    %17 = arith.mulf %15, %16 : vector<3x128xf32>
    %cst_10 = arith.constant dense<0.000000e+00> : vector<128xf32>
    %18 = vector.multi_reduction <add>, %17, %cst_10 [0] : vector<3x128xf32> to vector<128xf32>
    %19 = vector.shape_cast %18 : vector<128xf32> to vector<1x128xf32>
    %c2 = arith.constant 2 : index
    %c0_11 = arith.constant 0 : index
    %20 = vector.load %arg2[%c2, %c0_11] : memref<16x128xf32, #tpu.memory_space<vmem>>, vector<1x128xf32>
    tpu.vector_store %arg2[%c2, %c0_11], %19 {strides = array<i32>} : memref<16x128xf32, #tpu.memory_space<vmem>>, vector<1x128xf32>,
    %c27 = arith.constant 27 : index
    %c0_12 = arith.constant 0 : index
    %21 = vector.load %arg1[%c27, %c0_12] : memref<65x128xf32, #tpu.memory_space<vmem>>, vector<3x128xf32>
    %22 = arith.subf %21, %4 : vector<3x128xf32>
    %23 = arith.mulf %22, %22 : vector<3x128xf32>
    %24 = vector.broadcast %3 : vector<1x128xf32> to vector<3x128xf32>
    %25 = arith.mulf %23, %24 : vector<3x128xf32>
    %cst_13 = arith.constant dense<0.000000e+00> : vector<128xf32>
    %26 = vector.multi_reduction <add>, %25, %cst_13 [0] : vector<3x128xf32> to vector<128xf32>
    %27 = vector.shape_cast %26 : vector<128xf32> to vector<1x128xf32>
    %c4 = arith.constant 4 : index
    %c0_14 = arith.constant 0 : index
    %28 = vector.load %arg2[%c4, %c0_14] : memref<16x128xf32, #tpu.memory_space<vmem>>, vector<1x128xf32>
    tpu.vector_store %arg2[%c4, %c0_14], %27 {strides = array<i32>} : memref<16x128xf32, #tpu.memory_space<vmem>>, vector<1x128xf32>,
    %c18 = arith.constant 18 : index
    %c0_15 = arith.constant 0 : index
    %29 = vector.load %arg1[%c18, %c0_15] : memref<65x128xf32, #tpu.memory_space<vmem>>, vector<3x128xf32>
    %30 = arith.subf %29, %4 : vector<3x128xf32>
    %31 = arith.mulf %30, %30 : vector<3x128xf32>
    %32 = vector.broadcast %3 : vector<1x128xf32> to vector<3x128xf32>
    %33 = arith.mulf %31, %32 : vector<3x128xf32>
    %cst_16 = arith.constant dense<0.000000e+00> : vector<128xf32>
    %34 = vector.multi_reduction <add>, %33, %cst_16 [0] : vector<3x128xf32> to vector<128xf32>
    %35 = vector.shape_cast %34 : vector<128xf32> to vector<1x128xf32>
    %c1_17 = arith.constant 1 : index
    %c0_18 = arith.constant 0 : index
    %36 = vector.load %arg2[%c1_17, %c0_18] : memref<16x128xf32, #tpu.memory_space<vmem>>, vector<1x128xf32>
    tpu.vector_store %arg2[%c1_17, %c0_18], %35 {strides = array<i32>} : memref<16x128xf32, #tpu.memory_space<vmem>>, vector<1x128xf32>,
    %c24 = arith.constant 24 : index
    %c0_19 = arith.constant 0 : index
    %37 = vector.load %arg1[%c24, %c0_19] : memref<65x128xf32, #tpu.memory_space<vmem>>, vector<3x128xf32>
    %38 = arith.subf %37, %4 : vector<3x128xf32>
    %39 = arith.mulf %38, %38 : vector<3x128xf32>
    %40 = vector.broadcast %3 : vector<1x128xf32> to vector<3x128xf32>
    %41 = arith.mulf %39, %40 : vector<3x128xf32>
    %cst_20 = arith.constant dense<0.000000e+00> : vector<128xf32>
    %42 = vector.multi_reduction <add>, %41, %cst_20 [0] : vector<3x128xf32> to vector<128xf32>
    %43 = vector.shape_cast %42 : vector<128xf32> to vector<1x128xf32>
    %c3 = arith.constant 3 : index
    %c0_21 = arith.constant 0 : index
    %44 = vector.load %arg2[%c3, %c0_21] : memref<16x128xf32, #tpu.memory_space<vmem>>, vector<1x128xf32>
    tpu.vector_store %arg2[%c3, %c0_21], %43 {strides = array<i32>} : memref<16x128xf32, #tpu.memory_space<vmem>>, vector<1x128xf32>,
    %c30 = arith.constant 30 : index
    %c0_22 = arith.constant 0 : index
    %45 = vector.load %arg1[%c30, %c0_22] : memref<65x128xf32, #tpu.memory_space<vmem>>, vector<3x128xf32>
    %46 = arith.subf %45, %4 : vector<3x128xf32>
    %47 = arith.mulf %46, %46 : vector<3x128xf32>
    %48 = vector.broadcast %3 : vector<1x128xf32> to vector<3x128xf32>
    %49 = arith.mulf %47, %48 : vector<3x128xf32>
    %cst_23 = arith.constant dense<0.000000e+00> : vector<128xf32>
    %50 = vector.multi_reduction <add>, %49, %cst_23 [0] : vector<3x128xf32> to vector<128xf32>
    %51 = vector.shape_cast %50 : vector<128xf32> to vector<1x128xf32>
    %c5 = arith.constant 5 : index
    %c0_24 = arith.constant 0 : index
    %52 = vector.load %arg2[%c5, %c0_24] : memref<16x128xf32, #tpu.memory_space<vmem>>, vector<1x128xf32>
    tpu.vector_store %arg2[%c5, %c0_24], %51 {strides = array<i32>} : memref<16x128xf32, #tpu.memory_space<vmem>>, vector<1x128xf32>,
    %c7 = arith.constant 7 : index
    %c0_25 = arith.constant 0 : index
    %53 = vector.load %arg1[%c7, %c0_25] : memref<65x128xf32, #tpu.memory_space<vmem>>, vector<4x128xf32>
    %54 = vector.broadcast %3 : vector<1x128xf32> to vector<4x128xf32>
    %55 = arith.mulf %53, %54 : vector<4x128xf32>
    %c7_26 = arith.constant 7 : index
    %c0_27 = arith.constant 0 : index
    %56 = vector.load %arg1[%c7_26, %c0_27] : memref<65x128xf32, #tpu.memory_space<vmem>>, vector<1x128xf32>
    %cst_28 = arith.constant 1.000000e+00 : f32
    %57 = vector.broadcast %cst_28 : f32 to vector<1x128xf32>
    %58 = arith.subf %57, %56 : vector<1x128xf32>
    %59 = arith.mulf %58, %3 : vector<1x128xf32>
    %c4_29 = arith.constant 4 : index
    %c0_30 = arith.constant 0 : index
    %60 = vector.load %arg1[%c4_29, %c0_30] : memref<65x128xf32, #tpu.memory_space<vmem>>, vector<3x128xf32>
    %61 = vector.extract_strided_slice %4 {offsets = [0, 0], sizes = [1, 128], strides = [1, 1]} : vector<3x128xf32> to vector<1x128xf32>
    %62 = vector.broadcast %61 : vector<1x128xf32> to vector<4x128xf32>
    %63 = arith.mulf %62, %53 : vector<4x128xf32>
    %c33 = arith.constant 33 : index
    %c0_31 = arith.constant 0 : index
    %64 = vector.load %arg1[%c33, %c0_31] : memref<65x128xf32, #tpu.memory_space<vmem>>, vector<4x128xf32>
    %65 = arith.subf %63, %64 : vector<4x128xf32>
    %66 = arith.mulf %65, %65 : vector<4x128xf32>
    %67 = arith.mulf %66, %55 : vector<4x128xf32>
    %cst_32 = arith.constant dense<0.000000e+00> : vector<128xf32>
    %68 = vector.multi_reduction <add>, %67, %cst_32 [0] : vector<4x128xf32> to vector<128xf32>
    %69 = vector.shape_cast %68 : vector<128xf32> to vector<1x128xf32>
    %70 = arith.addf %2, %69 : vector<1x128xf32>
    %71 = vector.extract_strided_slice %60 {offsets = [0, 0], sizes = [1, 128], strides = [1, 1]} : vector<3x128xf32> to vector<1x128xf32>
    %72 = arith.mulf %71, %58 : vector<1x128xf32>
    %73 = vector.extract_strided_slice %64 {offsets = [0, 0], sizes = [1, 128], strides = [1, 1]} : vector<4x128xf32> to vector<1x128xf32>
    %74 = arith.subf %72, %73 : vector<1x128xf32>
    %75 = arith.mulf %74, %74 : vector<1x128xf32>
    %76 = arith.mulf %75, %59 : vector<1x128xf32>
    %77 = arith.addf %2, %76 : vector<1x128xf32>
    %c45 = arith.constant 45 : index
    %c0_33 = arith.constant 0 : index
    %78 = vector.load %arg1[%c45, %c0_33] : memref<65x128xf32, #tpu.memory_space<vmem>>, vector<4x128xf32>
    %79 = arith.subf %63, %78 : vector<4x128xf32>
    %80 = arith.mulf %79, %79 : vector<4x128xf32>
    %81 = arith.mulf %80, %55 : vector<4x128xf32>
    %cst_34 = arith.constant dense<0.000000e+00> : vector<128xf32>
    %82 = vector.multi_reduction <add>, %81, %cst_34 [0] : vector<4x128xf32> to vector<128xf32>
    %83 = vector.shape_cast %82 : vector<128xf32> to vector<1x128xf32>
    %84 = arith.addf %2, %83 : vector<1x128xf32>
    %85 = vector.extract_strided_slice %78 {offsets = [0, 0], sizes = [1, 128], strides = [1, 1]} : vector<4x128xf32> to vector<1x128xf32>
    %86 = arith.subf %72, %85 : vector<1x128xf32>
    %87 = arith.mulf %86, %86 : vector<1x128xf32>
    %88 = arith.mulf %87, %59 : vector<1x128xf32>
    %89 = arith.addf %2, %88 : vector<1x128xf32>
    %90 = vector.extract_strided_slice %4 {offsets = [1, 0], sizes = [1, 128], strides = [1, 1]} : vector<3x128xf32> to vector<1x128xf32>
    %91 = vector.broadcast %90 : vector<1x128xf32> to vector<4x128xf32>
    %92 = arith.mulf %91, %53 : vector<4x128xf32>
    %c37 = arith.constant 37 : index
    %c0_35 = arith.constant 0 : index
    %93 = vector.load %arg1[%c37, %c0_35] : memref<65x128xf32, #tpu.memory_space<vmem>>, vector<4x128xf32>
    %94 = arith.subf %92, %93 : vector<4x128xf32>
    %95 = arith.mulf %94, %94 : vector<4x128xf32>
    %96 = arith.mulf %95, %55 : vector<4x128xf32>
    %cst_36 = arith.constant dense<0.000000e+00> : vector<128xf32>
    %97 = vector.multi_reduction <add>, %96, %cst_36 [0] : vector<4x128xf32> to vector<128xf32>
    %98 = vector.shape_cast %97 : vector<128xf32> to vector<1x128xf32>
    %99 = arith.addf %70, %98 : vector<1x128xf32>
    %100 = vector.extract_strided_slice %60 {offsets = [1, 0], sizes = [1, 128], strides = [1, 1]} : vector<3x128xf32> to vector<1x128xf32>
    %101 = arith.mulf %100, %58 : vector<1x128xf32>
    %102 = vector.extract_strided_slice %93 {offsets = [0, 0], sizes = [1, 128], strides = [1, 1]} : vector<4x128xf32> to vector<1x128xf32>
    %103 = arith.subf %101, %102 : vector<1x128xf32>
    %104 = arith.mulf %103, %103 : vector<1x128xf32>
    %105 = arith.mulf %104, %59 : vector<1x128xf32>
    %106 = arith.addf %77, %105 : vector<1x128xf32>
    %c49 = arith.constant 49 : index
    %c0_37 = arith.constant 0 : index
    %107 = vector.load %arg1[%c49, %c0_37] : memref<65x128xf32, #tpu.memory_space<vmem>>, vector<4x128xf32>
    %108 = arith.subf %92, %107 : vector<4x128xf32>
    %109 = arith.mulf %108, %108 : vector<4x128xf32>
    %110 = arith.mulf %109, %55 : vector<4x128xf32>
    %cst_38 = arith.constant dense<0.000000e+00> : vector<128xf32>
    %111 = vector.multi_reduction <add>, %110, %cst_38 [0] : vector<4x128xf32> to vector<128xf32>
    %112 = vector.shape_cast %111 : vector<128xf32> to vector<1x128xf32>
    %113 = arith.addf %84, %112 : vector<1x128xf32>
    %114 = vector.extract_strided_slice %107 {offsets = [0, 0], sizes = [1, 128], strides = [1, 1]} : vector<4x128xf32> to vector<1x128xf32>
    %115 = arith.subf %101, %114 : vector<1x128xf32>
    %116 = arith.mulf %115, %115 : vector<1x128xf32>
    %117 = arith.mulf %116, %59 : vector<1x128xf32>
    %118 = arith.addf %89, %117 : vector<1x128xf32>
    %119 = vector.extract_strided_slice %4 {offsets = [2, 0], sizes = [1, 128], strides = [1, 1]} : vector<3x128xf32> to vector<1x128xf32>
    %120 = vector.broadcast %119 : vector<1x128xf32> to vector<4x128xf32>
    %121 = arith.mulf %120, %53 : vector<4x128xf32>
    %c41 = arith.constant 41 : index
    %c0_39 = arith.constant 0 : index
    %122 = vector.load %arg1[%c41, %c0_39] : memref<65x128xf32, #tpu.memory_space<vmem>>, vector<4x128xf32>
    %123 = arith.subf %121, %122 : vector<4x128xf32>
    %124 = arith.mulf %123, %123 : vector<4x128xf32>
    %125 = arith.mulf %124, %55 : vector<4x128xf32>
    %cst_40 = arith.constant dense<0.000000e+00> : vector<128xf32>
    %126 = vector.multi_reduction <add>, %125, %cst_40 [0] : vector<4x128xf32> to vector<128xf32>
    %127 = vector.shape_cast %126 : vector<128xf32> to vector<1x128xf32>
    %128 = arith.addf %99, %127 : vector<1x128xf32>
    %129 = vector.extract_strided_slice %60 {offsets = [2, 0], sizes = [1, 128], strides = [1, 1]} : vector<3x128xf32> to vector<1x128xf32>
    %130 = arith.mulf %129, %58 : vector<1x128xf32>
    %131 = vector.extract_strided_slice %122 {offsets = [0, 0], sizes = [1, 128], strides = [1, 1]} : vector<4x128xf32> to vector<1x128xf32>
    %132 = arith.subf %130, %131 : vector<1x128xf32>
    %133 = arith.mulf %132, %132 : vector<1x128xf32>
    %134 = arith.mulf %133, %59 : vector<1x128xf32>
    %135 = arith.addf %106, %134 : vector<1x128xf32>
    %c53 = arith.constant 53 : index
    %c0_41 = arith.constant 0 : index
    %136 = vector.load %arg1[%c53, %c0_41] : memref<65x128xf32, #tpu.memory_space<vmem>>, vector<4x128xf32>
    %137 = arith.subf %121, %136 : vector<4x128xf32>
    %138 = arith.mulf %137, %137 : vector<4x128xf32>
    %139 = arith.mulf %138, %55 : vector<4x128xf32>
    %cst_42 = arith.constant dense<0.000000e+00> : vector<128xf32>
    %140 = vector.multi_reduction <add>, %139, %cst_42 [0] : vector<4x128xf32> to vector<128xf32>
    %141 = vector.shape_cast %140 : vector<128xf32> to vector<1x128xf32>
    %142 = arith.addf %113, %141 : vector<1x128xf32>
    %143 = vector.extract_strided_slice %136 {offsets = [0, 0], sizes = [1, 128], strides = [1, 1]} : vector<4x128xf32> to vector<1x128xf32>
    %144 = arith.subf %130, %143 : vector<1x128xf32>
    %145 = arith.mulf %144, %144 : vector<1x128xf32>
    %146 = arith.mulf %145, %59 : vector<1x128xf32>
    %147 = arith.addf %118, %146 : vector<1x128xf32>
    %c6 = arith.constant 6 : index
    %c0_43 = arith.constant 0 : index
    %148 = vector.load %arg2[%c6, %c0_43] : memref<16x128xf32, #tpu.memory_space<vmem>>, vector<1x128xf32>
    tpu.vector_store %arg2[%c6, %c0_43], %128 {strides = array<i32>} : memref<16x128xf32, #tpu.memory_space<vmem>>, vector<1x128xf32>,
    %c7_44 = arith.constant 7 : index
    %c0_45 = arith.constant 0 : index
    %149 = vector.load %arg2[%c7_44, %c0_45] : memref<16x128xf32, #tpu.memory_space<vmem>>, vector<1x128xf32>
    tpu.vector_store %arg2[%c7_44, %c0_45], %142 {strides = array<i32>} : memref<16x128xf32, #tpu.memory_space<vmem>>, vector<1x128xf32>,
    %c8 = arith.constant 8 : index
    %c0_46 = arith.constant 0 : index
    %150 = vector.load %arg2[%c8, %c0_46] : memref<16x128xf32, #tpu.memory_space<vmem>>, vector<1x128xf32>
    tpu.vector_store %arg2[%c8, %c0_46], %135 {strides = array<i32>} : memref<16x128xf32, #tpu.memory_space<vmem>>, vector<1x128xf32>,
    %c9 = arith.constant 9 : index
    %c0_47 = arith.constant 0 : index
    %151 = vector.load %arg2[%c9, %c0_47] : memref<16x128xf32, #tpu.memory_space<vmem>>, vector<1x128xf32>
    tpu.vector_store %arg2[%c9, %c0_47], %147 {strides = array<i32>} : memref<16x128xf32, #tpu.memory_space<vmem>>, vector<1x128xf32>,
    %c14 = arith.constant 14 : index
    %c0_48 = arith.constant 0 : index
    %152 = vector.load %arg1[%c14, %c0_48] : memref<65x128xf32, #tpu.memory_space<vmem>>, vector<1x128xf32>
    %153 = arith.mulf %152, %3 : vector<1x128xf32>
    %c11 = arith.constant 11 : index
    %c0_49 = arith.constant 0 : index
    %154 = vector.load %arg1[%c11, %c0_49] : memref<65x128xf32, #tpu.memory_space<vmem>>, vector<3x128xf32>
    %155 = vector.broadcast %3 : vector<1x128xf32> to vector<3x128xf32>
    %156 = arith.mulf %154, %155 : vector<3x128xf32>
    %c7_50 = arith.constant 7 : index
    %c0_51 = arith.constant 0 : index
    %157 = vector.load %arg1[%c7_50, %c0_51] : memref<65x128xf32, #tpu.memory_space<vmem>>, vector<1x128xf32>
    %c57 = arith.constant 57 : index
    %c0_52 = arith.constant 0 : index
    %158 = vector.load %arg1[%c57, %c0_52] : memref<65x128xf32, #tpu.memory_space<vmem>>, vector<1x128xf32>
    %cst_53 = arith.constant 0.000000e+00 : f32
    %cst_54 = arith.constant 1.000000e+00 : f32
    %159 = vector.broadcast %cst_53 : f32 to vector<1x128xf32>
    %160 = arith.maximumf %159, %158 : vector<1x128xf32>
    %161 = vector.broadcast %cst_54 : f32 to vector<1x128xf32>
    %162 = arith.minimumf %161, %160 : vector<1x128xf32>
    %163 = arith.subf %162, %157 : vector<1x128xf32>
    %164 = arith.mulf %163, %163 : vector<1x128xf32>
    %165 = arith.mulf %164, %153 : vector<1x128xf32>
    %c58 = arith.constant 58 : index
    %c0_55 = arith.constant 0 : index
    %166 = vector.load %arg1[%c58, %c0_55] : memref<65x128xf32, #tpu.memory_space<vmem>>, vector<3x128xf32>
    %cst_56 = arith.constant 0.000000e+00 : f32
    %cst_57 = arith.constant 1.000000e+00 : f32
    %167 = vector.broadcast %cst_56 : f32 to vector<3x128xf32>
    %168 = arith.maximumf %167, %166 : vector<3x128xf32>
    %169 = vector.broadcast %cst_57 : f32 to vector<3x128xf32>
    %170 = arith.minimumf %169, %168 : vector<3x128xf32>
    %c8_58 = arith.constant 8 : index
    %c0_59 = arith.constant 0 : index
    %171 = vector.load %arg1[%c8_58, %c0_59] : memref<65x128xf32, #tpu.memory_space<vmem>>, vector<3x128xf32>
    %172 = arith.subf %170, %171 : vector<3x128xf32>
    %173 = arith.mulf %172, %172 : vector<3x128xf32>
    %174 = arith.mulf %173, %156 : vector<3x128xf32>
    %cst_60 = arith.constant dense<0.000000e+00> : vector<128xf32>
    %175 = vector.multi_reduction <add>, %174, %cst_60 [0] : vector<3x128xf32> to vector<128xf32>
    %176 = vector.shape_cast %175 : vector<128xf32> to vector<1x128xf32>
    %c10 = arith.constant 10 : index
    %c0_61 = arith.constant 0 : index
    %177 = vector.load %arg2[%c10, %c0_61] : memref<16x128xf32, #tpu.memory_space<vmem>>, vector<1x128xf32>
    tpu.vector_store %arg2[%c10, %c0_61], %176 {strides = array<i32>} : memref<16x128xf32, #tpu.memory_space<vmem>>, vector<1x128xf32>,
    %c12 = arith.constant 12 : index
    %c0_62 = arith.constant 0 : index
    %178 = vector.load %arg2[%c12, %c0_62] : memref<16x128xf32, #tpu.memory_space<vmem>>, vector<1x128xf32>
    tpu.vector_store %arg2[%c12, %c0_62], %165 {strides = array<i32>} : memref<16x128xf32, #tpu.memory_space<vmem>>, vector<1x128xf32>,
    %c61 = arith.constant 61 : index
    %c0_63 = arith.constant 0 : index
    %179 = vector.load %arg1[%c61, %c0_63] : memref<65x128xf32, #tpu.memory_space<vmem>>, vector<1x128xf32>
    %cst_64 = arith.constant 0.000000e+00 : f32
    %cst_65 = arith.constant 1.000000e+00 : f32
    %180 = vector.broadcast %cst_64 : f32 to vector<1x128xf32>
    %181 = arith.maximumf %180, %179 : vector<1x128xf32>
    %182 = vector.broadcast %cst_65 : f32 to vector<1x128xf32>
    %183 = arith.minimumf %182, %181 : vector<1x128xf32>
    %184 = arith.subf %183, %157 : vector<1x128xf32>
    %185 = arith.mulf %184, %184 : vector<1x128xf32>
    %186 = arith.mulf %185, %153 : vector<1x128xf32>
    %c62 = arith.constant 62 : index
    %c0_66 = arith.constant 0 : index
    %187 = vector.load %arg1[%c62, %c0_66] : memref<65x128xf32, #tpu.memory_space<vmem>>, vector<3x128xf32>
    %cst_67 = arith.constant 0.000000e+00 : f32
    %cst_68 = arith.constant 1.000000e+00 : f32
    %188 = vector.broadcast %cst_67 : f32 to vector<3x128xf32>
    %189 = arith.maximumf %188, %187 : vector<3x128xf32>
    %190 = vector.broadcast %cst_68 : f32 to vector<3x128xf32>
    %191 = arith.minimumf %190, %189 : vector<3x128xf32>
    %c8_69 = arith.constant 8 : index
    %c0_70 = arith.constant 0 : index
    %192 = vector.load %arg1[%c8_69, %c0_70] : memref<65x128xf32, #tpu.memory_space<vmem>>, vector<3x128xf32>
    %193 = arith.subf %191, %192 : vector<3x128xf32>
    %194 = arith.mulf %193, %193 : vector<3x128xf32>
    %195 = arith.mulf %194, %156 : vector<3x128xf32>
    %cst_71 = arith.constant dense<0.000000e+00> : vector<128xf32>
    %196 = vector.multi_reduction <add>, %195, %cst_71 [0] : vector<3x128xf32> to vector<128xf32>
    %197 = vector.shape_cast %196 : vector<128xf32> to vector<1x128xf32>
    %c11_72 = arith.constant 11 : index
    %c0_73 = arith.constant 0 : index
    %198 = vector.load %arg2[%c11_72, %c0_73] : memref<16x128xf32, #tpu.memory_space<vmem>>, vector<1x128xf32>
    tpu.vector_store %arg2[%c11_72, %c0_73], %197 {strides = array<i32>} : memref<16x128xf32, #tpu.memory_space<vmem>>, vector<1x128xf32>,
    %c13 = arith.constant 13 : index
    %c0_74 = arith.constant 0 : index
    %199 = vector.load %arg2[%c13, %c0_74] : memref<16x128xf32, #tpu.memory_space<vmem>>, vector<1x128xf32>
    tpu.vector_store %arg2[%c13, %c0_74], %186 {strides = array<i32>} : memref<16x128xf32, #tpu.memory_space<vmem>>, vector<1x128xf32>,
    %c14_75 = arith.constant 14 : index
    %c0_76 = arith.constant 0 : index
    %200 = vector.load %arg2[%c14_75, %c0_76] : memref<16x128xf32, #tpu.memory_space<vmem>>, vector<1x128xf32>
    tpu.vector_store %arg2[%c14_75, %c0_76], %3 {strides = array<i32>} : memref<16x128xf32, #tpu.memory_space<vmem>>, vector<1x128xf32>,
    return
  }
  func.func @transform_0(%arg0: i32) -> (i32, i32) {
    %c0_i32 = arith.constant 0 : i32
    %c0_i32_0 = arith.constant 0 : i32
    return %c0_i32, %arg0 : i32, i32
  }
  func.func @transform_1(%arg0: i32) -> (i32, i32) {
    %c0_i32 = arith.constant 0 : i32
    %c0_i32_0 = arith.constant 0 : i32
    return %arg0, %c0_i32 : i32, i32
  }
}

</mosaic_0001>

<bundles_post_ra>
// kernel: tpu_custom_call.1
= control target key start
LH: loop header
LB: loop body
LE: loop exit
PB: predicated region body
PF: predicated region fallthrough
CT: control target
= control target key end

     0   :  { %6 = vsyncpa [#allocation3], 0  ;;  %s974_s0 = inlined_call_operand.hbm [shape: f32[65,256], index: 0, kind: input, shape index: {}]   ;;  %s975_s1 = inlined_call_operand.hbm [shape: f32[32,128], index: 1, kind: output, shape index: {}]  }
   0x1   :  { %8 = vsyncpa [#allocation3 + $0x1], 0 }
   0x2   :  { %9 = vsyncpa [#allocation4], 0 }
   0x3   :  { %11 = vsyncpa [#allocation4 + $0x1], 0  ;;  %s690_s6 = smov 0   ;;  %s692_s7 = smov 0  }
   0x4   :  { %s694_s8 = smov 0   ;;  %s696_s9 = smov 0  }
   0x5 LB: > { %s711_s10 = sadd.s32 4294967295, %s670_s9   ;;  %s512_s11 = sadd.s32 4294967294, %s670_s9   ;;  %s670_s9 = sphi %s696_s9, %s990_s9   ;;  %s666_s8 = sphi %s694_s8, %s989_s8   ;;  %s662_s7 = sphi %s692_s7, %s988_s7   ;;  %s658_s6 = sphi %s690_s6, %s987_s6  }
   0x6   : > { %s715_s12 = sadd.s32 1, %s670_s9   ;;  %s24_s13 = sadd.s32 1, %s666_s8 }
   0x7   : > { %s21_s14 = ssub.s32 %s670_s9, %s715_s12  ;;  %p31_p0 = scmp.ne.s32.totalorder %s666_s8, %s662_s7 }
   0x8   : > { %p22_p1 = scmp.eq.s32.totalorder %s21_s14, 0  ;;  %p32_p2 = scmp.eq.s32.totalorder %s670_s9, 0 }
   0x9   : > { %p37_p3 = scmp.ne.s32.totalorder %s662_s7, %s658_s6  ;;  %p38_p4 = scmp.eq.s32.totalorder %s711_s10, 0 }
   0xa   : > { %s727_s15 = scalar_select %p22_p1, %s666_s8, %s24_s13  }
   0xb   : > { %p33_p5 = por %p32_p2, %p31_p0  ;;  %p729_p6 = por %p38_p4, %p37_p3 }
   0xc   : > { %p61_p7 = scmp.eq.s32.totalorder %s711_s10, 1  ;;  %p67_p8 = scmp.eq.s32.totalorder %s512_s11, 1 }
   0xd   : > { %s978_s16 = scalar_select %p729_p6, 1, 0 }
   0xe   : > { %p538_p10 = scmp.lt.s32.totalorder %s670_s9, 2  ;;  %p736_p11 = por %p61_p7, %p31_p0 }
   0xf   : > { %p740_p12 = por %p67_p8, %p37_p3  ;;  %s87_s19 = sand.u32 1, %s666_s8  }
  0x10   : > { %s979_s17 = scalar_select %p736_p11, 1, 0 }
  0x11   : > { %s980_s18 = scalar_select %p740_p12, 1, 0 }
  0x12   : > { %s515_s20 = sshll.u32 %s670_s9, 7  ;;  %s524_s21 = smul.u32 72, %s87_s19 }
  0x13   : > { %s749_s24 = scalar_lea.hbm %s974_s0, %s515_s20  ;;  %p751_p13 = pnand %p538_p10, %p33_p5 }
  0x14   : > { %s91_s26 = scalar_lea.vmem [#allocation2], %s524_s21  ;;  %s758_s28 = scalar_lea.sflag [#allocation3], %s87_s19 }
  0x15   : > { %s97_s27 = sshll.u32 %s91_s26, 4  ;;  %s578_s29 = scalar_lea.hbm %s749_s24, 1152  ;;  %s755_s27 = int_to_ptr.vmem [resolvable:$true] %s97_s27 }
  0x16   : > { %p579_p1 = scmp.ne.s32.totalorder %s749_s24, %s578_s29  ;;  %p580_p2 = pneg %p751_p13 }
  0x17   : > { %s583_s3 = scalar_lea.hbm %s974_s0, 2304  ;;  %p584_p5 = scmp.lt.s32.totalorder %s749_s24, %s974_s0 }
  0x18   : > { %p581_p3 = pnand %p580_p2, %p579_p1  ;;  %p585_p7 = scmp.lt.s32.totalorder %s583_s3, %s578_s29 }
  0x1a   : > { %p582_p4 = pneg %p581_p3  ;;  %p586_p8 = por %p585_p7, %p584_p5 }
  0x1c   : > { %p587_p10 = pnand %p586_p8, %p582_p4 }
  0x1e   : > { %590 = shalt.err (!%p587_p10)
}
  0x1f   : > { %s591_s11 = scalar_lea.vmem %s755_s27, 1152  ;;  %s672_s13 = smov [#allocation2]  }
  0x20   : > { %p592_p9 = scmp.ne.s32.totalorder %s755_s27, %s591_s11  ;;  %s596_s14 = sshll.u32 %s672_s13, 4  ;;  %s597_s14 = int_to_ptr.vmem [resolvable:$false] %s596_s14 }
  0x21   : > { %s598_s19 = scalar_lea.vmem %s597_s14, 2304  ;;  %p599_p3 = scmp.lt.s32.totalorder %s755_s27, %s597_s14 }
  0x22   : > { %p594_p0 = pnand %p592_p9, %p580_p2  ;;  %p600_p12 = scmp.lt.s32.totalorder %s598_s19, %s591_s11 }
  0x24   : > { %p595_p1 = pneg %p594_p0  ;;  %p601_p11 = por %p600_p12, %p599_p3 }
  0x26   : > { %p602_p6 = pnand %p601_p11, %p595_p1 }
  0x28   : > { %605 = shalt.err (!%p602_p6)
}
  0x29   : > { %s673_s20 = smov 256   ;;  %s674_s21 = smov 128  }
  0x2a   : > { %s675_s22 = smov 8   ;;  %p105_p9 = scmp.lt.s32.totalorder %s670_s9, 3 }
  0x2b   : > { %533 = dma.hbm_to_vmem [thread:$0]  (!%p751_p13), %s749_s24, 1152, %s755_s27, %s758_s28, %s673_s20, %s674_s21, %s675_s22  }
  0x2c   : > { %p982_p0 = scmp.ge.s32.totalorder %s670_s9, 1 }
  0x2e   : > { %p106_p2 = pnand %p982_p0, %p105_p9 }
  0x2f   : > { %s783_s23 = sand.u32 (!%p106_p2), 1, %s662_s7   ;;  %p983_p6 = scmp.ne.s32.totalorder (!%p106_p2), %s978_s16, 0 }
  0x30   : > { %109 = sbr.rel (%p106_p2) target bundleno = 137 (0x89), region = 24  ;;  %s112_s29 = scalar_lea.sflag (!%p106_p2), [#allocation3], %s783_s23 }
  0x31   : > { %s525_s26 = smul.u32 (!%p106_p2), 72, %s783_s23 }
  0x33   : > { %s787_s30 = scalar_lea.vmem (!%p106_p2), [#allocation2], %s525_s26 }
  0x35   : > { %649 = dma.done.wait (%p983_p6), %s112_s29, 1152  }
  0x36   : > { %651 = vsyncadd (%p983_p6), %s112_s29, 4294966144  ;;  %s517_s24 = sshll.u32 %s783_s23, 4  ;;  %v142_v0 = vlaneseq  ;;  %v676_v1 = vmov 0.0   ;;  %vm147_vm0 = vcmask 1042432   ;;  %v799_v6 = vld [vmem:[%s787_s30] sm:$0x1] }
  0x37   : > { %s794_s25 = scalar_lea.vmem [#allocation5], %s517_s24  ;;  %v138_v7 = vld [vmem:[%s787_s30 + $0x1] sm:$0x7]  ;;  %v139_v8 = vld [vmem:[%s787_s30 + $0xf] sm:$0x7]  ;;  %vm231_vm1 = vcmask 1043456  }
  0x38   : > { %135 = vst [vmem:[%s794_s25] sm:$0xff] %v676_v1  ;;  %136 = vst [vmem:[%s794_s25 + $0x8] sm:$0xff] %v676_v1  ;;  %v143_v2 = vshrl.u32 %v142_v0, 7  ;;  %v140_v9 = vsub.f32 %v139_v8, %v138_v7  ;;  %v156_v11 = vld [vmem:[%s787_s30 + $0x15] sm:$0x7]  ;;  %v168_v12 = vld [vmem:[%s787_s30 + $0x1b] sm:$0x7] }
  0x39   : > { %424 = vst [vmem:[%s794_s25 + $0xe] sm:$0x1] %v799_v6  ;;  %v180_v13 = vld [vmem:[%s787_s30 + $0x12] sm:$0x7]  ;;  %v157_v16 = vsub.f32 %v156_v11, %v138_v7  ;;  %v169_v17 = vsub.f32 %v168_v12, %v138_v7  ;;  %v192_v19 = vld [vmem:[%s787_s30 + $0x18] sm:$0x7] }
  0x3a   : > { %v144_v3 = vsub.s32 0, %v143_v2  ;;  %v263_v4 = vsub.s32 1, %v143_v2  ;;  %v319_v5 = vsub.s32 2, %v143_v2  ;;  %v181_v18 = vsub.f32 %v180_v13, %v138_v7  ;;  %v204_v20 = vld [vmem:[%s787_s30 + $0x1e] sm:$0x7]  ;;  %s523_s16 = sshll.u32 %s711_s10, 8 }
  0x3b   : > { %v814_v21 = vld [vmem:[%s787_s30 + $0x7] sm:$0xf]  ;;  %v141_v23 = vmul.f32 %v140_v9, %v140_v9  ;;  %v193_v24 = vsub.f32 %v192_v19, %v138_v7  ;;  %v205_v25 = vsub.f32 %v204_v20, %v138_v7  ;;  %v823_v27 = vld [vmem:[%s787_s30 + $0x21] sm:$0xf]  ;;  %v158_v28 = vmul.f32 %v157_v16, %v157_v16  ;;  %s439_s27 = sshll.u32 %s794_s25, 4  ;;  %s927_s3 = scalar_lea.hbm %s975_s1, %s523_s16  ;;  %s929_s27 = int_to_ptr.vmem [resolvable:$true] %s439_s27 }
  0x3c   : > { %v804_v10 = vrot.slane %v799_v6, %v144_v3  ;;  %v225_v14 = vrot.slane %v138_v7, %v144_v3  ;;  %v264_v15 = vrot.slane %v138_v7, %v263_v4  ;;  %v816_v22 = vrot.slane %v138_v7, %v319_v5  ;;  %v829_v32 = vld [vmem:[%s787_s30 + $0x25] sm:$0xf]  ;;  %s426_s4 = scalar_lea.sflag [#allocation4], %s783_s23  ;;  %s606_s5 = scalar_lea.vmem %s929_s27, 256 }
  0x3d   : > { %v170_v29 = vmul.f32 %v169_v17, %v169_v17  ;;  %v182_v30 = vmul.f32 %v181_v18, %v181_v18  ;;  %v194_v34 = vmul.f32 %v193_v24, %v193_v24  ;;  %v206_v35 = vmul.f32 %v205_v25, %v205_v25  ;;  %v855_v25 = vld [vmem:[%s787_s30 + $0x2d] sm:$0xf]  ;;  %p607_p11 = scmp.ne.s32.totalorder %s929_s27, %s606_s5  ;;  %p984_p12 = scmp.ne.s32.totalorder %s979_s17, 0 }
  0x3e   : > { %v820_v26 = vmul.f32 %v814_v21, %v804_v10  ;;  %v826_v31 = vmul.f32 %v225_v14, %v814_v21  ;;  %v146_v33 = vmul.f32 %v804_v10, %v141_v23  ;;  %v833_v36 = vmul.f32 %v264_v15, %v814_v21  ;;  %s677_s10 = smov [#allocation5]  }
  0x3f   : > { %v159_v37 = vmul.f32 %v158_v28, %v804_v10  ;;  %v171_v38 = vmul.f32 %v170_v29, %v804_v10  ;;  %v183_v39 = vmul.f32 %v182_v30, %v804_v10  ;;  %v195_v42 = vmul.f32 %v194_v34, %v804_v10  ;;  %v858_v34 = vld [vmem:[%s787_s30 + $0x31] sm:$0xf]  ;;  %p608_p13 = pnand %p607_p11, %p984_p12  ;;  %s610_s11 = sshll.u32 %s677_s10, 4  ;;  %s611_s11 = int_to_ptr.vmem [resolvable:$false] %s610_s11 }
  0x40   : > { %v228_v40 = vsub.f32 %v826_v31, %v823_v27  ;;  %v148_v41 = vsel %vm147_vm0, %v146_v33, 0.0  ;;  %v207_v43 = vmul.f32 %v206_v35, %v804_v10  ;;  %v267_v44 = vsub.f32 %v833_v36, %v829_v32  ;;  %v218_v35 = vld [vmem:[%s787_s30 + $0x7] sm:$0x1]  ;;  %s612_s13 = scalar_lea.vmem %s611_s11, 512  ;;  %p613_p5 = scmp.lt.s32.totalorder %s929_s27, %s611_s11 }
  0x41   : > { %v149_v45 = vrot.slane %v148_v41, 4  ;;  %v160_v46 = vsel %vm147_vm0, %v159_v37, 0.0  ;;  %v172_v47 = vsel %vm147_vm0, %v171_v38, 0.0  ;;  %v184_v48 = vsel %vm147_vm0, %v183_v39, 0.0  ;;  %p609_p4 = pneg %p608_p13  ;;  %p614_p7 = scmp.lt.s32.totalorder %s612_s13, %s606_s5 }
  0x42   : > { %v161_v49 = vrot.slane %v160_v46, 4  ;;  %v173_v50 = vrot.slane %v172_v47, 4  ;;  %v185_v51 = vrot.slane %v184_v48, 4  ;;  %v196_v52 = vsel %vm147_vm0, %v195_v42, 0.0  ;;  %v865_v42 = vld [vmem:[%s787_s30 + $0x35] sm:$0xf] }
  0x43   : > { %v150_v53 = vadd.f32 %v149_v45, %v148_v41  ;;  %v197_v54 = vrot.slane %v196_v52, 4  ;;  %v208_v55 = vsel %vm147_vm0, %v207_v43, 0.0  ;;  %v229_v56 = vmul.f32 %v228_v40, %v228_v40  ;;  %v862_v41 = vld [vmem:[%s787_s30 + $0x29] sm:$0xf]  ;;  %p615_p8 = por %p614_p7, %p613_p5 }
  0x44   : > { %v162_v57 = vadd.f32 %v161_v49, %v160_v46  ;;  %v174_v58 = vadd.f32 %v173_v50, %v172_v47  ;;  %v186_v59 = vadd.f32 %v185_v51, %v184_v48  ;;  %v209_v60 = vrot.slane %v208_v55, 4 }
  0x45   : > { %v151_v61 = vrot.slane %v150_v53, 2  ;;  %v198_v62 = vadd.f32 %v197_v54, %v196_v52  ;;  %v230_v63 = vmul.f32 %v229_v56, %v820_v26  ;;  %v268_v0 = vmul.f32 %v267_v44, %v267_v44  ;;  %p616_p10 = pnand %p615_p8, %p609_p4 }
  0x46   : > { %v163_v1 = vrot.slane %v162_v57, 2  ;;  %v175_v2 = vrot.slane %v174_v58, 2  ;;  %v187_v3 = vrot.slane %v186_v59, 2  ;;  %v210_v4 = vadd.f32 %v209_v60, %v208_v55  ;;  %v221_v55 = vld [vmem:[%s787_s30 + $0x4] sm:$0x7] }
  0x47   : > { %v152_v5 = vadd.f32 %v151_v61, %v150_v53  ;;  %v199_v7 = vrot.slane %v198_v62, 2  ;;  %v232_v8 = vsel %vm231_vm1, %v230_v63, 0.0  ;;  %v269_v9 = vmul.f32 %v268_v0, %v820_v26 }
  0x48   : > { %v164_v11 = vadd.f32 %v163_v1, %v162_v57  ;;  %v176_v12 = vadd.f32 %v175_v2, %v174_v58  ;;  %v188_v13 = vadd.f32 %v187_v3, %v186_v59  ;;  %v211_v14 = vrot.slane %v210_v4, 2 }
  0x49   : > { %v153_v15 = vrot.slane %v152_v5, 1  ;;  %v200_v16 = vadd.f32 %v199_v7, %v198_v62  ;;  %v233_v17 = vrot.slane %v232_v8, 4  ;;  %v270_v18 = vsel %vm231_vm1, %v269_v9, 0.0 }
  0x4a   : > { %v165_v19 = vrot.slane %v164_v11, 1  ;;  %v177_v20 = vrot.slane %v176_v12, 1  ;;  %v189_v23 = vrot.slane %v188_v13, 1  ;;  %v212_v24 = vadd.f32 %v211_v14, %v210_v4 }
  0x4b   : > { %v154_v28 = vadd.f32 %v153_v15, %v152_v5  ;;  %v201_v29 = vrot.slane %v200_v16, 1  ;;  %v234_v30 = vadd.f32 %v233_v17, %v232_v8  ;;  %v271_v33 = vrot.slane %v270_v18, 4 }
  0x4c   : > { %v166_v37 = vadd.f32 %v165_v19, %v164_v11  ;;  %v178_v38 = vadd.f32 %v177_v20, %v176_v12  ;;  %v190_v39 = vadd.f32 %v189_v23, %v188_v13  ;;  %v213_v40 = vrot.slane %v212_v24, 1 }
  0x4d   : > { %155 = vst [vmem:[%s794_s25] sm:$0x1] %v154_v28  ;;  %v202_v43 = vadd.f32 %v201_v29, %v200_v16  ;;  %v235_v44 = vrot.slane %v234_v30, 2  ;;  %v272_v45 = vadd.f32 %v271_v33, %v270_v18  ;;  %v321_v46 = vmul.f32 %v816_v22, %v814_v21 }
  0x4e   : > { %167 = vst [vmem:[%s794_s25 + $0x2] sm:$0x1] %v166_v37  ;;  %179 = vst [vmem:[%s794_s25 + $0x4] sm:$0x1] %v178_v38  ;;  %v214_v47 = vadd.f32 %v213_v40, %v212_v24  ;;  %v246_v48 = vsub.f32 %v826_v31, %v855_v25  ;;  %v296_v49 = vsub.f32 %v833_v36, %v858_v34  ;;  %v219_v50 = vsub.f32 1.0, %v218_v35 }
  0x4f   : > { %191 = vst [vmem:[%s794_s25 + $0x1] sm:$0x1] %v190_v39  ;;  %203 = vst [vmem:[%s794_s25 + $0x3] sm:$0x1] %v202_v43  ;;  %v236_v51 = vadd.f32 %v235_v44, %v234_v30  ;;  %v273_v52 = vrot.slane %v272_v45, 2  ;;  %v323_v53 = vsub.f32 %v321_v46, %v862_v41  ;;  %v350_v54 = vsub.f32 %v321_v46, %v865_v42 }
  0x50   : > { %215 = vst [vmem:[%s794_s25 + $0x5] sm:$0x1] %v214_v47  ;;  %v247_v21 = vmul.f32 %v246_v48, %v246_v48  ;;  %v297_v22 = vmul.f32 %v296_v49, %v296_v49  ;;  %v240_v56 = vmul.f32 %v221_v55, %v219_v50  ;;  %v279_v62 = vrot.slane %v219_v50, 7 }
  0x51   : > { %v237_v57 = vrot.slane %v236_v51, 1  ;;  %v274_v58 = vadd.f32 %v273_v52, %v272_v45  ;;  %v324_v59 = vmul.f32 %v323_v53, %v323_v53  ;;  %v351_v31 = vmul.f32 %v350_v54, %v350_v54 }
  0x52   : > { %v248_v60 = vmul.f32 %v247_v21, %v820_v26  ;;  %v298_v36 = vmul.f32 %v297_v22, %v820_v26  ;;  %v241_v61 = vsub.f32 %v240_v56, %v823_v27  ;;  %v888_v2 = vmul.f32 %v219_v50, %v799_v6 }
  0x53   : > { %v275_v63 = vrot.slane %v274_v58, 1  ;;  %v325_v0 = vmul.f32 %v324_v59, %v820_v26  ;;  %v352_v1 = vmul.f32 %v351_v31, %v820_v26  ;;  %v281_v7 = vmul.f32 %v279_v62, %v221_v55 }
  0x54   : > { %v249_v3 = vsel %vm231_vm1, %v248_v60, 0.0  ;;  %v299_v4 = vsel %vm231_vm1, %v298_v36, 0.0  ;;  %v242_v5 = vmul.f32 %v241_v61, %v241_v61  ;;  %v238_v8 = vadd.f32 %v237_v57, %v236_v51  ;;  %v386_v57 = vld [vmem:[%s787_s30 + $0x3a] sm:$0x7]  ;;  %v380_v60 = vld [vmem:[%s787_s30 + $0x39] sm:$0x1] }
  0x55   : > { %v326_v9 = vsel %vm231_vm1, %v325_v0, 0.0  ;;  %v250_v11 = vrot.slane %v249_v3, 4  ;;  %v300_v27 = vrot.slane %v299_v4, 4  ;;  %v276_v12 = vadd.f32 %v275_v63, %v274_v58  ;;  %v408_v63 = vld [vmem:[%s787_s30 + $0x3e] sm:$0x7] }
  0x56   : > { %v327_v13 = vrot.slane %v326_v9, 4  ;;  %v353_v14 = vsel %vm231_vm1, %v352_v1, 0.0  ;;  %v283_v26 = vrot.slane %v829_v32, 7  ;;  %v243_v18 = vmul.f32 %v242_v5, %v888_v2 }
  0x57   : > { %v251_v15 = vadd.f32 %v250_v11, %v249_v3  ;;  %v301_v16 = vadd.f32 %v300_v27, %v299_v4  ;;  %v354_v17 = vrot.slane %v353_v14, 4  ;;  %v288_v23 = vrot.slane %v888_v2, 7  ;;  %v377_v4 = vld [vmem:[%s787_s30 + $0xb] sm:$0x7]  ;;  %v389_v27 = vld [vmem:[%s787_s30 + $0x8] sm:$0x7] }
  0x58   : > { %v328_v19 = vadd.f32 %v327_v13, %v326_v9  ;;  %v285_v20 = vsub.f32 %v281_v7, %v283_v26  ;;  %v334_v24 = vrot.slane %v219_v50, 6  ;;  %v338_v33 = vrot.slane %v862_v41, 6 }
  0x59   : > { %v252_v28 = vrot.slane %v251_v15, 2  ;;  %v302_v29 = vrot.slane %v301_v16, 2  ;;  %v355_v30 = vadd.f32 %v354_v17, %v353_v14  ;;  %v342_v32 = vrot.slane %v888_v2, 6 }
  0x5a   : > { %v329_v35 = vrot.slane %v328_v19, 2  ;;  %v286_v37 = vmul.f32 %v285_v20, %v285_v20  ;;  %v336_v38 = vmul.f32 %v334_v24, %v221_v55  ;;  %v257_v44 = vsub.f32 %v240_v56, %v855_v25 }
  0x5b   : > { %v253_v39 = vadd.f32 %v252_v28, %v251_v15  ;;  %v303_v40 = vadd.f32 %v302_v29, %v301_v16  ;;  %v356_v43 = vrot.slane %v355_v30, 2  ;;  %v308_v48 = vrot.slane %v858_v34, 7  ;;  %v379_v15 = vld [vmem:[%s787_s30 + $0x7] sm:$0x1] }
  0x5c   : > { %v330_v45 = vadd.f32 %v329_v35, %v328_v19  ;;  %v290_v46 = vmul.f32 %v288_v23, %v286_v37  ;;  %v340_v47 = vsub.f32 %v336_v38, %v338_v33  ;;  %v277_v49 = vadd.f32 %v276_v12, %v238_v8  ;;  %v375_v12 = vld [vmem:[%s787_s30 + $0xe] sm:$0x1]  ;;  %v411_v19 = vld [vmem:[%s787_s30 + $0x8] sm:$0x7] }
  0x5d   : > { %v254_v50 = vrot.slane %v253_v39, 1  ;;  %v304_v41 = vrot.slane %v303_v40, 1  ;;  %v357_v51 = vadd.f32 %v356_v43, %v355_v30  ;;  %v310_v55 = vsub.f32 %v281_v7, %v308_v48  ;;  %v402_v7 = vld [vmem:[%s787_s30 + $0x3d] sm:$0x1] }
  0x5e   : > { %v331_v52 = vrot.slane %v330_v45, 1  ;;  %v292_v53 = vrot.slane %v290_v46, 1  ;;  %v341_v54 = vmul.f32 %v340_v47, %v340_v47  ;;  %v258_v56 = vmul.f32 %v257_v44, %v257_v44 }
  0x5f   : > { %v255_v21 = vadd.f32 %v254_v50, %v253_v39  ;;  %v305_v22 = vadd.f32 %v304_v41, %v303_v40  ;;  %v358_v25 = vrot.slane %v357_v51, 1  ;;  %v311_v31 = vmul.f32 %v310_v55, %v310_v55 }
  0x60   : > { %v332_v58 = vadd.f32 %v331_v52, %v330_v45  ;;  %v294_v59 = vadd.f32 %v292_v53, %v243_v18  ;;  %v344_v34 = vmul.f32 %v342_v32, %v341_v54  ;;  %v362_v62 = vrot.slane %v865_v42, 6 }
  0x61   : > { %v306_v36 = vadd.f32 %v305_v22, %v255_v21  ;;  %v359_v61 = vadd.f32 %v358_v25, %v357_v51  ;;  %v312_v3 = vmul.f32 %v311_v31, %v288_v23  ;;  %v387_v5 = vmax.f32 %v386_v57, 0.0 }
  0x62   : > { %v333_v0 = vadd.f32 %v332_v58, %v277_v49  ;;  %v346_v1 = vrot.slane %v344_v34, 2  ;;  %v259_v9 = vmul.f32 %v258_v56, %v888_v2  ;;  %v364_v11 = vsub.f32 %v336_v38, %v362_v62 }
  0x63   : > { %v360_v8 = vadd.f32 %v359_v61, %v306_v36  ;;  %v381_v13 = vmax.f32 %v380_v60, 0.0  ;;  %v314_v14 = vrot.slane %v312_v3, 1  ;;  %v388_v26 = vmin.f32 %v387_v5, 1.0 }
  0x64   : > { %371 = vst [vmem:[%s794_s25 + $0x6] sm:$0x1] %v333_v0  ;;  %v348_v42 = vadd.f32 %v346_v1, %v294_v59  ;;  %v409_v16 = vmax.f32 %v408_v63, 0.0  ;;  %v365_v17 = vmul.f32 %v364_v11, %v364_v11  ;;  %v403_v20 = vmax.f32 %v402_v7, 0.0 }
  0x65   : > { %372 = vst [vmem:[%s794_s25 + $0x7] sm:$0x1] %v360_v8  ;;  %v382_v18 = vmin.f32 %v381_v13, 1.0  ;;  %v378_v23 = vmul.f32 %v377_v4, %v804_v10  ;;  %v390_v2 = vsub.f32 %v388_v26, %v389_v27  ;;  %v376_v24 = vmul.f32 %v375_v12, %v799_v6 }
  0x66   : > { %373 = vst [vmem:[%s794_s25 + $0x8] sm:$0x1] %v348_v42  ;;  %v410_v28 = vmin.f32 %v409_v16, 1.0  ;;  %v316_v29 = vadd.f32 %v314_v14, %v259_v9  ;;  %v366_v30 = vmul.f32 %v365_v17, %v342_v32  ;;  %v404_v35 = vmin.f32 %v403_v20, 1.0 }
  0x67   : > { %v383_v33 = vsub.f32 %v382_v18, %v379_v15  ;;  %v391_v37 = vmul.f32 %v390_v2, %v390_v2 }
  0x68   : > { %v412_v38 = vsub.f32 %v410_v28, %v411_v19  ;;  %v368_v39 = vrot.slane %v366_v30, 2  ;;  %v405_v43 = vsub.f32 %v404_v35, %v379_v15 }
  0x69   : > { %v384_v40 = vmul.f32 %v383_v33, %v383_v33  ;;  %v392_v44 = vmul.f32 %v391_v37, %v378_v23 }
  0x6a   : > { %v413_v45 = vmul.f32 %v412_v38, %v412_v38  ;;  %v370_v46 = vadd.f32 %v368_v39, %v316_v29  ;;  %v406_v47 = vmul.f32 %v405_v43, %v405_v43 }
  0x6b   : > { %v385_v10 = vmul.f32 %v384_v40, %v376_v24  ;;  %v393_v6 = vsel %vm147_vm0, %v392_v44, 0.0 }
  0x6c   : > { %v414_v48 = vmul.f32 %v413_v45, %v378_v23  ;;  %374 = vst [vmem:[%s794_s25 + $0x9] sm:$0x1] %v370_v46  ;;  %v394_v32 = vrot.slane %v393_v6, 4  ;;  %v407_v49 = vmul.f32 %v406_v47, %v376_v24 }
  0x6d   : > { %401 = vst [vmem:[%s794_s25 + $0xc] sm:$0x1] %v385_v10 }
  0x6e   : > { %v415_v50 = vsel %vm147_vm0, %v414_v48, 0.0  ;;  %v395_v41 = vadd.f32 %v394_v32, %v393_v6  ;;  %423 = vst [vmem:[%s794_s25 + $0xd] sm:$0x1] %v407_v49 }
  0x6f   : > { %v416_v51 = vrot.slane %v415_v50, 4 }
  0x70   : > { %v396_v52 = vrot.slane %v395_v41, 2 }
  0x71   : > { %v417_v53 = vadd.f32 %v416_v51, %v415_v50 }
  0x72   : > { %v397_v54 = vadd.f32 %v396_v52, %v395_v41 }
  0x73   : > { %v418_v55 = vrot.slane %v417_v53, 2 }
  0x74   : > { %v398_v21 = vrot.slane %v397_v54, 1 }
  0x75   : > { %v419_v22 = vadd.f32 %v418_v55, %v417_v53 }
  0x76   : > { %v399_v25 = vadd.f32 %v398_v21, %v397_v54 }
  0x77   : > { %v420_v56 = vrot.slane %v419_v22, 1 }
  0x78   : > { %400 = vst [vmem:[%s794_s25 + $0xa] sm:$0x1] %v399_v25 }
  0x79   : > { %v421_v57 = vadd.f32 %v420_v56, %v419_v22 }
  0x7b   : > { %422 = vst [vmem:[%s794_s25 + $0xb] sm:$0x1] %v421_v57 }
  0x7c   : > { %619 = shalt.err (!%p616_p10)
}
  0x7d   : > { %s620_s14 = scalar_lea.hbm %s927_s3, 256  ;;  %s624_s21 = scalar_lea.hbm %s975_s1, 512 }
  0x7e   : > { %p621_p1 = scmp.ne.s32.totalorder %s927_s3, %s620_s14  ;;  %p625_p0 = scmp.lt.s32.totalorder %s927_s3, %s975_s1 }
  0x7f   : > { %p626_p2 = scmp.lt.s32.totalorder %s624_s21, %s620_s14 }
  0x80   : > { %p622_p3 = pnand %p621_p1, %p984_p12 }
  0x81   : > { %p627_p6 = por %p626_p2, %p625_p0 }
  0x82   : > { %p623_p9 = pneg %p622_p3 }
  0x84   : > { %p628_p11 = pnand %p627_p6, %p623_p9 }
  0x86   : > { %631 = shalt.err (!%p628_p11)
}
  0x87   : > { %s678_s29 = smov 128   ;;  %s679_s30 = smov 8  }
  0x88   : > { %528 = dma.vmem_to_hbm [thread:$0]  (%p984_p12), %s929_s27, 256, %s927_s3, %s426_s4, %s678_s29, %s678_s29, %s679_s30  }
  0x89 PF: > { %s454_s24 = sand.u32 1, %s658_s6   ;;  %p985_p13 = scmp.ne.s32.totalorder %s980_s18, 0 }
  0x8a   : > { %p986_p4 = scmp.ge.s32.totalorder %s670_s9, 2  ;;  %s455_s25 = scalar_lea.sflag [#allocation4], %s454_s24 }
  0x8c   : > { %p535_p5 = pnand %p986_p4, %p985_p13 }
  0x8e   : > { %p536_p7 = pneg %p535_p5 }
  0x90   : > { %653 = dma.done.wait (%p536_p7), %s455_s25, 256  }
  0x91   : > { %655 = vsyncadd (%p536_p7), %s455_s25, 4294967040  ;;  %p14_p8 = scmp.ge.s32.totalorder %s715_s12, 4   ;;  %s987_s6 = smov %s662_s7 }
  0x92   : > { %s988_s7 = smov %s666_s8  ;;  %s989_s8 = smov %s727_s15 }
  0x93   : > { %s990_s9 = smov %s715_s12  ;;  %16 = sbr.rel (!%p14_p8) target bundleno = 5 (0x5), region = 69 }
  0x98   :  { %460 = vsyncpa [#allocation3], 1 }
  0x99   :  { %462 = vsyncpa [#allocation3 + $0x1], 1 }
  0x9a   :  { %463 = vsyncpa [#allocation4], 1 }
  0x9b   :  { %465 = vsyncpa [#allocation4 + $0x1], 1 }

</bundles_post_ra>
